<compile_context>
chip_gen: v5e
topology: v5e:2x2
jax: 0.10.0
libtpu: 0.0.40
codegen_flags: <defaults>
</compile_context>

<pallas_src>
import functools
import math

import jax
import jax.numpy as jnp
from jax.experimental import pallas as pl
from jax.experimental.pallas import tpu as pltpu


# ----------------------------------------------------------------------------
# Kernels
# ----------------------------------------------------------------------------
def _pe_add_bcast_kernel(x_ref, pe_ref, o_ref, *, n_rep):
    """x/o: (tile_seq, n_rep*d_model); pe: (tile_seq, d_model) replicated in-reg."""
    pe = pe_ref[...]
    if n_rep > 1:
        pe = jnp.tile(pe, (1, n_rep))        # lane-aligned concat; compute-side, free under DMA
    o_ref[...] = x_ref[...] + pe


def _pe_add_kernel(x_ref, pe_ref, o_ref):
    """Fallback: PE already tiled across batch in the wrapper."""
    o_ref[...] = x_ref[...] + pe_ref[...]


# ----------------------------------------------------------------------------
# PE table construction (same math as the PyTorch __init__; deterministic).
# ----------------------------------------------------------------------------
def make_pe_table(max_len, d_model, dtype=jnp.float32):
    """Builds the (max_len, 1, d_model) positional-encoding buffer."""
    position = jnp.arange(0.0, max_len, dtype=jnp.float32)[:, None]          # (max_len, 1)
    div_term = jnp.exp(
        jnp.arange(0.0, d_model, 2.0, dtype=jnp.float32)
        * -(math.log(10000.0) / d_model)
    )                                                                         # (ceil(d/2),)
    angles = position * div_term                                              # (max_len, ceil(d/2))
    pe = jnp.zeros((max_len, d_model), dtype=jnp.float32)
    pe = pe.at[:, 0::2].set(jnp.sin(angles))
    # Guard odd d_model (PyTorch original implicitly assumes even d_model).
    pe = pe.at[:, 1::2].set(jnp.cos(angles)[:, : d_model // 2])
    return pe[:, None, :].astype(dtype)                                       # (max_len, 1, d_model)


# ----------------------------------------------------------------------------
# Tile-size heuristics: ~4 MiB activation blocks.  With x-in + out double-
# buffered plus a tiny PE block that is <= ~17 MiB VMEM, well under the 32 MiB
# limit set below (and under v7x's physical 64 MiB).
# ----------------------------------------------------------------------------
_TARGET_BLOCK_BYTES = 4 * 1024 * 1024


def _round_down_to(v, m):
    return (v // m) * m


def _choose_tile_seq(seq, row_bytes, target_block_bytes=_TARGET_BLOCK_BYTES):
    if seq <= 8:
        return seq  # tiny sequence: single full-extent block
    rows = target_block_bytes // max(row_bytes, 1)
    rows = max(8, _round_down_to(rows, 8))
    rows = min(rows, max(8, _round_down_to(seq, 8)))
    if seq >= 16 and pl.cdiv(seq, rows) < 2:
        # Prefer >= 2 grid steps so the "parallel" axes can shard across
        # v7x's two TensorCores.
        rows = max(8, _round_down_to(seq // 2, 8))
    return rows


def _choose_tile_rep(batch, d_model, itemsize, target_block_bytes=_TARGET_BLOCK_BYTES):
    """Largest divisor of batch such that an 8-row block stays within budget."""
    best = 1
    for rep in range(1, batch + 1):
        if batch % rep == 0 and 8 * rep * d_model * itemsize <= target_block_bytes:
            best = rep
    return best


# ----------------------------------------------------------------------------
# Forward wrapper.
# ----------------------------------------------------------------------------
def positional_encoding_forward(x, pe_table, *, donate_x=False):
    """x: (seq, batch, d_model); pe_table: (max_len, 1, d_model)."""
    seq, batch, d_model = x.shape
    n_lanes = batch * d_model
    itemsize = x.dtype.itemsize

    x2d = x.reshape(seq, n_lanes)                               # contiguous, free
    pe_rows = pe_table[:seq, 0, :].astype(x.dtype)              # (seq, d_model)

    vmem_limit = 32 * 1024 * 1024
    use_bcast = (batch == 1) or (d_model % 128 == 0)

    if use_bcast:
        # ---- Main path: PE read once per seq tile, replicated in-kernel. ----
        tile_rep = 1 if batch == 1 else _choose_tile_rep(batch, d_model, itemsize)
        lane_width = tile_rep * d_model
        row_bytes = lane_width * itemsize
        tile_seq = _choose_tile_seq(seq, row_bytes)
        grid = (pl.cdiv(seq, tile_seq), batch // tile_rep)

        flops = seq * n_lanes                                    # one add per element
        bytes_accessed = 2 * seq * n_lanes * itemsize + seq * d_model * itemsize

        out2d = pl.pallas_call(
            functools.partial(_pe_add_bcast_kernel, n_rep=tile_rep),
            out_shape=jax.ShapeDtypeStruct((seq, n_lanes), x.dtype),
            grid_spec=pl.GridSpec(
                grid=grid,
                in_specs=[
                    pl.BlockSpec((tile_seq, lane_width), lambda i, j: (i, j)),
                    pl.BlockSpec((tile_seq, d_model), lambda i, j: (i, 0)),
                ],
                out_specs=pl.BlockSpec((tile_seq, lane_width), lambda i, j: (i, j)),
            ),
            compiler_params=pltpu.CompilerParams(
                dimension_semantics=("parallel", "parallel"),
                vmem_limit_bytes=vmem_limit,
            ),
            cost_estimate=pl.CostEstimate(
                flops=flops, transcendentals=0, bytes_accessed=bytes_accessed
            ),
            input_output_aliases={0: 0} if donate_x else {},
        )(x2d, pe_rows)
    else:
        # ---- Fallback (d_model not lane-aligned): pre-tile PE in the wrapper. ----
        pe2d = jnp.tile(pe_rows, (1, batch))                     # (seq, batch*d_model)
        row_bytes = n_lanes * itemsize
        tile_seq = _choose_tile_seq(seq, row_bytes)
        grid = (pl.cdiv(seq, tile_seq),)

        flops = seq * n_lanes
        bytes_accessed = 3 * seq * n_lanes * itemsize

        # TODO(synk): if a single 8-row block still exceeds the VMEM budget
        # (extremely wide batch*d_model with unaligned d_model), additionally
        # tile the lane axis.
        out2d = pl.pallas_call(
            _pe_add_kernel,
            out_shape=jax.ShapeDtypeStruct((seq, n_lanes), x.dtype),
            grid_spec=pl.GridSpec(
                grid=grid,
                in_specs=[
                    pl.BlockSpec((tile_seq, n_lanes), lambda i: (i, 0)),
                    pl.BlockSpec((tile_seq, n_lanes), lambda i: (i, 0)),
                ],
                out_specs=pl.BlockSpec((tile_seq, n_lanes), lambda i: (i, 0)),
            ),
            compiler_params=pltpu.CompilerParams(
                dimension_semantics=("parallel",),
                vmem_limit_bytes=vmem_limit,
            ),
            cost_estimate=pl.CostEstimate(
                flops=flops, transcendentals=0, bytes_accessed=bytes_accessed
            ),
            input_output_aliases={0: 0} if donate_x else {},
        )(x2d, pe2d)

    return out2d.reshape(seq, batch, d_model)


# ----------------------------------------------------------------------------
# Self-test
# ----------------------------------------------------------------------------
def _run_and_check(key, seq, batch, d_model, max_len):
    x = jax.random.normal(key, (seq, batch, d_model), dtype=jnp.float32)
    pe_table = make_pe_table(max_len, d_model, dtype=x.dtype)

    out = positional_encoding_forward(x, pe_table)
    out = jax.block_until_ready(out)

    # Reference in plain JAX (same math as PyTorch forward, eval mode).
    ref = x + pe_table[:seq]
    assert out.shape == (seq, batch, d_model)
    assert jnp.allclose(out, ref, atol=1e-6, rtol=1e-6)


if __name__ == "__main__":
    key = jax.random.PRNGKey(0)
    k1, k2 = jax.random.split(key)

    # Config 1: small shapes consistent with the module's forward (seq, batch, d_model);
    # exercises the fallback (non-lane-aligned d_model) path.
    _run_and_check(k1, seq=8, batch=2, d_model=32, max_len=64)

    # Config 2: lane-aligned d_model; exercises the in-kernel PE broadcast path.
    _run_and_check(k2, seq=16, batch=2, d_model=128, max_len=64)

    print("KERNEL_OK")
</pallas_src>

<mosaic_0001>
module attributes {stable_mosaic.version = 11 : i64} {
  func.func @_pe_add_kernel(%arg0: i32, %arg1: memref<8x64xf32, #tpu.memory_space<vmem>>, %arg2: memref<8x64xf32, #tpu.memory_space<vmem>>, %arg3: memref<8x64xf32, #tpu.memory_space<vmem>>) attributes {dimension_semantics = [#tpu.dimension_semantics<parallel>], iteration_bounds = array<i64: 1>, scalar_prefetch = 0 : i64, scratch_operands = 0 : i64, tpu.core_type = #tpu.core_type<tc>, window_params = [{transform_indices = @transform_0, window_bounds = array<i64: 8, 64>}, {transform_indices = @transform_1, window_bounds = array<i64: 8, 64>}, {transform_indices = @transform_2, window_bounds = array<i64: 8, 64>}]} {
    %c0 = arith.constant 0 : index
    %c0_0 = arith.constant 0 : index
    %0 = vector.load %arg1[%c0, %c0_0] : memref<8x64xf32, #tpu.memory_space<vmem>>, vector<8x64xf32>
    %c0_1 = arith.constant 0 : index
    %c0_2 = arith.constant 0 : index
    %1 = vector.load %arg2[%c0_1, %c0_2] : memref<8x64xf32, #tpu.memory_space<vmem>>, vector<8x64xf32>
    %2 = arith.addf %0, %1 : vector<8x64xf32>
    %c0_3 = arith.constant 0 : index
    %c0_4 = arith.constant 0 : index
    %3 = vector.load %arg3[%c0_3, %c0_4] : memref<8x64xf32, #tpu.memory_space<vmem>>, vector<8x64xf32>
    tpu.vector_store %arg3[%c0_3, %c0_4], %2 {strides = array<i32>} : memref<8x64xf32, #tpu.memory_space<vmem>>, vector<8x64xf32>,
    return
  }
  func.func @transform_0(%arg0: i32) -> (i32, i32) {
    %c0_i32 = arith.constant 0 : i32
    %c0_i32_0 = arith.constant 0 : i32
    return %arg0, %c0_i32 : i32, i32
  }
  func.func @transform_1(%arg0: i32) -> (i32, i32) {
    %c0_i32 = arith.constant 0 : i32
    %c0_i32_0 = arith.constant 0 : i32
    return %arg0, %c0_i32 : i32, i32
  }
  func.func @transform_2(%arg0: i32) -> (i32, i32) {
    %c0_i32 = arith.constant 0 : i32
    %c0_i32_0 = arith.constant 0 : i32
    return %arg0, %c0_i32 : i32, i32
  }
}

</mosaic_0001>

<bundles_post_ra>
// kernel: tpu_custom_call.1
= control target key start
LH: loop header
LB: loop body
LE: loop exit
PB: predicated region body
PF: predicated region fallthrough
CT: control target
= control target key end

     0   :  { %7 = vsyncpa [#allocation3], 0  ;;  %s171_s0 = inlined_call_operand.hbm [shape: f32[8,64], index: 0, kind: input, shape index: {}]   ;;  %s172_s1 = inlined_call_operand.hbm [shape: f32[8,64], index: 1, kind: input, shape index: {}]   ;;  %s173_s2 = inlined_call_operand.hbm [shape: f32[8,64], index: 2, kind: output, shape index: {}]  }
   0x1   :  { %8 = vsyncpa [#allocation6], 0 }
   0x2   :  { %9 = vsyncpa [#allocation4], 0  ;;  %s15_s11 = sshll.u32 %s171_s0, 4  ;;  %s144_s12 = smov [#allocation2]   ;;  %s16_s11 = int_to_ptr.hbm [resolvable:$true] %s15_s11 }
   0x3   :  { %s17_s13 = sshll.u32 %s144_s12, 4  ;;  %s26_s16 = sshll.u32 %s172_s1, 4  ;;  %s18_s13 = int_to_ptr.vmem [resolvable:$true] %s17_s13  ;;  %s27_s16 = int_to_ptr.hbm [resolvable:$true] %s26_s16 }
   0x4   :  { %20 = dma.hbm_to_vmem [thread:$0]  %s16_s11, 128, %s18_s13, [#allocation3]  }
   0x5   :  { %s145_s17 = smov [#allocation5]  }
   0x6   :  { %s28_s18 = sshll.u32 %s145_s17, 4  ;;  %s29_s18 = int_to_ptr.vmem [resolvable:$true] %s28_s18 }
   0x7   :  { %31 = dma.hbm_to_vmem [thread:$0]  %s27_s16, 128, %s29_s18, [#allocation6]  }
   0x8   :  { %138 = dma.done.wait [#allocation3], 128  }
   0x9   :  { %139 = vsyncadd [#allocation3], 4294967168 }
   0xa   :  { %140 = dma.done.wait [#allocation6], 128  }
   0xb   :  { %141 = vsyncadd [#allocation6], 4294967168  ;;  %s146_s19 = smov [#allocation7]   ;;  %s52_s22 = sshll.u32 %s173_s2, 4  ;;  %v40_v0 = vld [vmem:[#allocation2] sm:$0xff]  ;;  %v41_v1 = vld [vmem:[#allocation5] sm:$0xff]  ;;  %s53_s22 = int_to_ptr.hbm [resolvable:$true] %s52_s22 }
   0xc   :  { %s50_s0 = sshll.u32 %s146_s19, 4  ;;  %vm43_vm0 = vcmask 523264   ;;  %v42_v2 = vadd.f32 %v41_v1, %v40_v0  ;;  %s51_s0 = int_to_ptr.vmem [resolvable:$true] %s50_s0 }
   0xe   :  { %44 = vst.msk [vmem:[#allocation7] sm:$0xff] %vm43_vm0, %v42_v2 }
   0xf   :  { %55 = dma.vmem_to_hbm [thread:$0]  %s51_s0, 128, %s53_s22, [#allocation4]  }
  0x10   :  { %142 = dma.done.wait [#allocation4], 128  }
  0x11   :  { %143 = vsyncadd [#allocation4], 4294967168 }
  0x12   :  { %60 = vsyncpa [#allocation3], 1 }
  0x13   :  { %61 = vsyncpa [#allocation6], 1 }
  0x14   :  { %62 = vsyncpa [#allocation4], 1 }

</bundles_post_ra>
